<compile_context>
chip_gen: v6e
topology: v6e:2x2x1
jax: 0.10.0
libtpu: 0.0.40
codegen_flags: <defaults>
</compile_context>

<pallas_src>
import functools

import jax
import jax.numpy as jnp
from jax import lax
from jax.experimental import pallas as pl
from jax.experimental.pallas import tpu as pltpu


def _triplet_semihard_kernel(emb_tile_ref, emb_full_ref, emb_pos_ref,
                             lab_col_ref, lab_row_ref, lab_pos_ref,
                             sq_row_ref, sq_pos_ref, out_ref, *, margin):
    i = pl.program_id(0)                 # anchor-tile index
    j = pl.program_id(1)                 # positive-chunk index
    a = emb_tile_ref.shape[0]            # anchors in this tile
    n = emb_full_ref.shape[0]            # total batch size
    tp = emb_pos_ref.shape[0]            # positives in this chunk

    emb_tile = emb_tile_ref[...]                                           # (A, C)

    # ---- full distance rows d[a, k] for all k (needed for negative mining) --------
    gram = lax.dot_general(
        emb_tile, emb_full_ref[...],
        dimension_numbers=(((1,), (1,)), ((), ())),
        preferred_element_type=jnp.float32)                                # (A, N)
    et32 = emb_tile.astype(jnp.float32)
    sq_col = jnp.sum(et32 * et32, axis=1, keepdims=True)                   # (A, 1)
    pdist_sq = sq_col + sq_row_ref[...] - 2.0 * gram                       # (A, N)

    a0 = i * a
    row_ids = lax.broadcasted_iota(jnp.int32, (a, n), 0) + a0
    col_ids = lax.broadcasted_iota(jnp.int32, (a, n), 1)
    not_diag = col_ids != row_ids
    # squared=True branch of the reference: clamp(min=0) subsumes the error_mask mul.
    d = jnp.where(not_diag, jnp.maximum(pdist_sq, 0.0), 0.0)               # (A, N)

    adj_not = lab_col_ref[...] != lab_row_ref[...]                         # (A, N)
    row_max = jnp.max(d, axis=1, keepdims=True)                            # (A, 1)
    row_min = jnp.min(d, axis=1, keepdims=True)                            # (A, 1) == 0
    # masked_maximum of d over negatives (reference `negatives_inside`).
    neg_inside = jnp.max(jnp.where(adj_not, d - row_min, 0.0),
                         axis=1, keepdims=True) + row_min                  # (A, 1)

    # ---- d[a, p] for this positive-column chunk ------------------------------------
    if tp == n:
        # Single chunk: reuse the full row block, no extra MXU work.
        d_p = d
        not_diag_p = not_diag
        adj_p = jnp.logical_not(adj_not)
    else:
        gram_p = lax.dot_general(
            emb_tile, emb_pos_ref[...],
            dimension_numbers=(((1,), (1,)), ((), ())),
            preferred_element_type=jnp.float32)                            # (A, TP)
        pdist_p_sq = sq_col + sq_pos_ref[...] - 2.0 * gram_p
        p0 = j * tp
        col_ids_p = lax.broadcasted_iota(jnp.int32, (a, tp), 1) + p0
        row_ids_p = lax.broadcasted_iota(jnp.int32, (a, tp), 0) + a0
        not_diag_p = col_ids_p != row_ids_p
        d_p = jnp.where(not_diag_p, jnp.maximum(pdist_p_sq, 0.0), 0.0)     # (A, TP)
        adj_p = lab_col_ref[...] == lab_pos_ref[...]                       # (A, TP)

    # mask_final without a cube: a semihard candidate exists for (a, p) iff the
    # farthest negative of anchor a is strictly farther than d(a, p).
    mask_final = neg_inside > d_p                                          # (A, TP)

    # Semihard negative per (anchor, positive): masked_minimum over negatives k with
    # d[a, k] > d[a, p].  Only cube intermediate, bounded to a (A, TP, N) slab.
    shifted = d - row_max                                                  # (A, N) <= 0
    cond = jnp.logical_and(adj_not[:, None, :], d[:, None, :] > d_p[:, :, None])
    neg_outside = jnp.min(jnp.where(cond, shifted[:, None, :], 0.0),
                          axis=-1) + row_max                               # (A, TP)

    semi_hard = jnp.where(mask_final, neg_outside, neg_inside)             # (A, TP)
    loss_mat = margin + d_p - semi_hard                                    # (A, TP)

    pos_mask = jnp.logical_and(adj_p, not_diag_p)                          # (A, TP)
    pos_loss = jnp.where(pos_mask, jnp.maximum(loss_mat, 0.0), 0.0)

    # Accumulate per-anchor partial numerator across positive chunks.
    @pl.when(j == 0)
    def _():
        out_ref[...] = jnp.zeros_like(out_ref)
    out_ref[...] += jnp.sum(pos_loss, axis=1, keepdims=True)               # (A, 1)


def _pick_tiles(n, cube_budget_bytes=12 << 20):
    """(anchor tile, positive chunk).  Anchor tile: largest multiple of 8 dividing n
    such that the (A, TP, N) cube intermediates fit the budget.  Positive chunk: 128
    (lane-aligned, BlockSpec-legal) when it divides n, else the full row."""
    if n % 8 != 0:
        return n, n                      # tiny / odd batch: single block
    tile_p = 128 if (n % 128 == 0 and n > 128) else n
    tile_a = 8
    for cand in (16, 32, 64, 128, 256):
        if n % cand == 0 and 3 * 4 * cand * tile_p * n <= cube_budget_bytes:
            tile_a = cand
    return tile_a, tile_p


def triplet_semihard_loss(embeddings, target, margin=1.0):
    """embeddings: (N, C) float (f32/bf16), target: (N,) int labels -> f32 scalar."""
    emb = jnp.asarray(embeddings)
    if not jnp.issubdtype(emb.dtype, jnp.floating) or emb.dtype.itemsize > 4:
        emb = emb.astype(jnp.float32)
    n, c = emb.shape

    lab = jnp.asarray(target).astype(jnp.int32)
    lab_col = lab.reshape(n, 1)
    lab_row = lab.reshape(1, n)

    # Row of squared norms (1, N): computed once here, reused by every grid step.
    emb_f32 = emb.astype(jnp.float32)
    sq_row = jnp.sum(emb_f32 * emb_f32, axis=1).reshape(1, n)

    tile_a, tile_p = _pick_tiles(n)
    grid = (n // tile_a, n // tile_p)

    # VMEM estimate: cube slab + (A, N) temporaries + resident embeddings.  Only
    # override the default scoped limit when the estimate exceeds it; cap at 64 MiB
    # (v7x physical).  TODO(synk): query pltpu.get_tpu_info() for a per-chip cap.
    est = (3 * 4 * tile_a * tile_p * n
           + 10 * 4 * tile_a * n
           + 3 * n * c * emb.dtype.itemsize
           + (2 << 20))
    cp_kwargs = {"dimension_semantics": ("parallel", "arbitrary")}
    if est > (32 << 20):
        cp_kwargs["vmem_limit_bytes"] = int(min(est, 64 << 20))

    out = pl.pallas_call(
        functools.partial(_triplet_semihard_kernel, margin=float(margin)),
        out_shape=jax.ShapeDtypeStruct((n, 1), jnp.float32),
        grid=grid,
        in_specs=[
            pl.BlockSpec((tile_a, c), lambda i, j: (i, 0)),   # anchor tile
            pl.BlockSpec((n, c), lambda i, j: (0, 0)),        # full embeddings
            pl.BlockSpec((tile_p, c), lambda i, j: (j, 0)),   # positive-chunk embeddings
            pl.BlockSpec((tile_a, 1), lambda i, j: (i, 0)),   # anchor labels (column)
            pl.BlockSpec((1, n), lambda i, j: (0, 0)),        # all labels (row)
            pl.BlockSpec((1, tile_p), lambda i, j: (0, j)),   # positive-chunk labels
            pl.BlockSpec((1, n), lambda i, j: (0, 0)),        # squared norms (row)
            pl.BlockSpec((1, tile_p), lambda i, j: (0, j)),   # squared norms (chunk)
        ],
        out_specs=pl.BlockSpec((tile_a, 1), lambda i, j: (i, 0)),
        compiler_params=pltpu.CompilerParams(**cp_kwargs),
    )(emb, emb, emb, lab_col, lab_row, lab_row, sq_row, sq_row)

    # Denominator depends only on labels: same-label pairs excluding the diagonal.
    num_positives = jnp.sum((lab_col == lab_row).astype(jnp.float32)) - jnp.float32(n)
    return jnp.sum(out) / num_positives


def reference_loss(embeddings, target, margin=1.0):
    """Pure-JAX transcription of the PyTorch module, used only to validate."""
    emb = embeddings.astype(jnp.float32)
    n = emb.shape[0]
    labels = target.astype(jnp.int32)[:, None]
    sq = jnp.sum(emb ** 2, axis=1, keepdims=True)
    pd_sq = sq + sq.T - 2.0 * (emb @ emb.T)
    err = pd_sq <= 0.0
    pd = jnp.maximum(pd_sq, 0.0) * jnp.logical_not(err)
    pd = pd * (1.0 - jnp.eye(n, dtype=jnp.float32))
    adjacency = labels == labels.T
    adj_not = jnp.logical_not(adjacency)
    pd_tile = jnp.tile(pd, (n, 1))
    mask = jnp.tile(adj_not, (n, 1)) & (pd_tile > jnp.reshape(pd.T, (-1, 1)))
    mask_final = jnp.reshape(
        jnp.sum(mask.astype(jnp.float32), axis=1, keepdims=True) > 0.0, (n, n)).T
    adj_not_f = adj_not.astype(jnp.float32)
    mask_f = mask.astype(jnp.float32)
    axis_max = jnp.max(pd_tile, axis=1, keepdims=True)
    neg_out = jnp.min((pd_tile - axis_max) * mask_f, axis=1, keepdims=True) + axis_max
    neg_out = jnp.reshape(neg_out, (n, n)).T
    axis_min = jnp.min(pd, axis=1, keepdims=True)
    neg_in = jnp.max((pd - axis_min) * adj_not_f, axis=1, keepdims=True) + axis_min
    neg_in = jnp.tile(neg_in, (1, n))
    semi = jnp.where(mask_final, neg_out, neg_in)
    loss_mat = margin + pd - semi
    mask_pos = adjacency.astype(jnp.float32) - jnp.eye(n, dtype=jnp.float32)
    num_pos = jnp.sum(mask_pos)
    return jnp.sum(jnp.maximum(loss_mat * mask_pos, 0.0)) / num_pos


if __name__ == "__main__":
    key = jax.random.PRNGKey(0)
    k1, k2 = jax.random.split(key)

    # Small case (single block: tile_p == N path).
    N1, C1 = 8, 32
    emb1 = jax.random.normal(k1, (N1, C1), dtype=jnp.float32)
    tgt1 = jnp.array([0, 0, 1, 1, 2, 2, 3, 3], dtype=jnp.int32)
    loss1 = jax.block_until_ready(triplet_semihard_loss(emb1, tgt1, margin=1.0))
    ref1 = jax.block_until_ready(reference_loss(emb1, tgt1, margin=1.0))
    assert jnp.allclose(loss1, ref1, rtol=1e-4, atol=1e-4), (loss1, ref1)

    # Larger case exercising the chunked positive axis (grid (8, 2)).  Integer-valued
    # embeddings make every pairwise distance exactly representable, so the kernel and
    # the pure-JAX reference agree independent of MXU precision.
    N2, C2 = 256, 32
    emb2 = jnp.round(jax.random.normal(k2, (N2, C2), dtype=jnp.float32) * 2.0)
    tgt2 = jnp.arange(N2, dtype=jnp.int32) % 16
    loss2 = jax.block_until_ready(triplet_semihard_loss(emb2, tgt2, margin=1.0))
    ref2 = jax.block_until_ready(reference_loss(emb2, tgt2, margin=1.0))
    assert jnp.allclose(loss2, ref2, rtol=1e-4, atol=1e-4), (loss2, ref2)

    print("KERNEL_OK")
</pallas_src>

<mosaic_0001>
module attributes {stable_mosaic.version = 11 : i64} {
  func.func @_triplet_semihard_kernel(%arg0: i32, %arg1: i32, %arg2: memref<8x32xf32, #tpu.memory_space<vmem>>, %arg3: memref<8x32xf32, #tpu.memory_space<vmem>>, %arg4: memref<8x32xf32, #tpu.memory_space<vmem>>, %arg5: memref<8x1xi32, #tpu.memory_space<vmem>>, %arg6: memref<1x8xi32, #tpu.memory_space<vmem>>, %arg7: memref<1x8xi32, #tpu.memory_space<vmem>>, %arg8: memref<1x8xf32, #tpu.memory_space<vmem>>, %arg9: memref<1x8xf32, #tpu.memory_space<vmem>>, %arg10: memref<8x1xf32, #tpu.memory_space<vmem>>) attributes {dimension_semantics = [#tpu.dimension_semantics<parallel>, #tpu.dimension_semantics<arbitrary>], iteration_bounds = array<i64: 1, 1>, scalar_prefetch = 0 : i64, scratch_operands = 0 : i64, tpu.core_type = #tpu.core_type<tc>, window_params = [{transform_indices = @transform_0, window_bounds = array<i64: 8, 32>}, {pipeline_mode = #tpu.pipeline_mode<synchronous>, transform_indices = @transform_1, window_bounds = array<i64: 8, 32>}, {transform_indices = @transform_2, window_bounds = array<i64: 8, 32>}, {transform_indices = @transform_3, window_bounds = array<i64: 8, 1>}, {pipeline_mode = #tpu.pipeline_mode<synchronous>, transform_indices = @transform_4, window_bounds = array<i64: 1, 8>}, {transform_indices = @transform_5, window_bounds = array<i64: 1, 8>}, {pipeline_mode = #tpu.pipeline_mode<synchronous>, transform_indices = @transform_6, window_bounds = array<i64: 1, 8>}, {transform_indices = @transform_7, window_bounds = array<i64: 1, 8>}, {transform_indices = @transform_8, window_bounds = array<i64: 8, 1>}]} {
    %c0 = arith.constant 0 : index
    %c0_0 = arith.constant 0 : index
    %0 = vector.load %arg2[%c0, %c0_0] : memref<8x32xf32, #tpu.memory_space<vmem>>, vector<8x32xf32>
    %c0_1 = arith.constant 0 : index
    %c0_2 = arith.constant 0 : index
    %1 = vector.load %arg3[%c0_1, %c0_2] : memref<8x32xf32, #tpu.memory_space<vmem>>, vector<8x32xf32>
    %cst = arith.constant dense<0.000000e+00> : vector<8x8xf32>
    %2 = tpu.matmul %0, %1, %cst {dimension_numbers = #tpu.dot_dimension_numbers<[1], [1], [0], [0], [0, 0, 1, 0], [], []>} : vector<8x32xf32>, vector<8x32xf32>, vector<8x8xf32> -> vector<8x8xf32>
    %3 = arith.mulf %0, %0 : vector<8x32xf32>
    %cst_3 = arith.constant dense<0.000000e+00> : vector<8xf32>
    %4 = vector.multi_reduction <add>, %3, %cst_3 [1] : vector<8x32xf32> to vector<8xf32>
    %5 = vector.shape_cast %4 : vector<8xf32> to vector<8x1xf32>
    %c0_4 = arith.constant 0 : index
    %c0_5 = arith.constant 0 : index
    %6 = vector.load %arg8[%c0_4, %c0_5] : memref<1x8xf32, #tpu.memory_space<vmem>>, vector<1x8xf32>
    %7 = vector.broadcast %5 : vector<8x1xf32> to vector<8x8xf32>
    %8 = vector.broadcast %6 : vector<1x8xf32> to vector<8x8xf32>
    %9 = arith.addf %7, %8 : vector<8x8xf32>
    %cst_6 = arith.constant 2.000000e+00 : f32
    %10 = vector.broadcast %cst_6 : f32 to vector<8x8xf32>
    %11 = arith.mulf %10, %2 : vector<8x8xf32>
    %12 = arith.subf %9, %11 : vector<8x8xf32>
    %c8_i32 = arith.constant 8 : i32
    %13 = arith.muli %arg0, %c8_i32 : i32
    %14 = tpu.iota {dimensions = array<i32: 0>} : vector<8x8xi32>
    %15 = vector.broadcast %13 : i32 to vector<8x8xi32>
    %16 = arith.addi %14, %15 : vector<8x8xi32>
    %17 = tpu.iota {dimensions = array<i32: 1>} : vector<8x8xi32>
    %18 = arith.cmpi ne, %17, %16 : vector<8x8xi32>
    %cst_7 = arith.constant 0.000000e+00 : f32
    %19 = vector.broadcast %cst_7 : f32 to vector<8x8xf32>
    %20 = arith.maximumf %12, %19 : vector<8x8xf32>
    %cst_8 = arith.constant 0.000000e+00 : f32
    %21 = vector.broadcast %cst_8 : f32 to vector<8x8xf32>
    %22 = arith.select %18, %20, %21 : vector<8x8xi1>, vector<8x8xf32>
    %c0_9 = arith.constant 0 : index
    %c0_10 = arith.constant 0 : index
    %23 = vector.load %arg5[%c0_9, %c0_10] : memref<8x1xi32, #tpu.memory_space<vmem>>, vector<8x1xi32>
    %c0_11 = arith.constant 0 : index
    %c0_12 = arith.constant 0 : index
    %24 = vector.load %arg6[%c0_11, %c0_12] : memref<1x8xi32, #tpu.memory_space<vmem>>, vector<1x8xi32>
    %25 = vector.broadcast %23 : vector<8x1xi32> to vector<8x8xi32>
    %26 = vector.broadcast %24 : vector<1x8xi32> to vector<8x8xi32>
    %27 = arith.cmpi ne, %25, %26 : vector<8x8xi32>
    %cst_13 = arith.constant dense<0xFF800000> : vector<8xf32>
    %28 = vector.multi_reduction <maximumf>, %22, %cst_13 [1] : vector<8x8xf32> to vector<8xf32>
    %29 = vector.shape_cast %28 : vector<8xf32> to vector<8x1xf32>
    %cst_14 = arith.constant dense<0x7F800000> : vector<8xf32>
    %30 = vector.multi_reduction <minimumf>, %22, %cst_14 [1] : vector<8x8xf32> to vector<8xf32>
    %31 = vector.shape_cast %30 : vector<8xf32> to vector<8x1xf32>
    %32 = vector.broadcast %31 : vector<8x1xf32> to vector<8x8xf32>
    %33 = arith.subf %22, %32 : vector<8x8xf32>
    %cst_15 = arith.constant 0.000000e+00 : f32
    %34 = vector.broadcast %cst_15 : f32 to vector<8x8xf32>
    %35 = arith.select %27, %33, %34 : vector<8x8xi1>, vector<8x8xf32>
    %cst_16 = arith.constant dense<0xFF800000> : vector<8xf32>
    %36 = vector.multi_reduction <maximumf>, %35, %cst_16 [1] : vector<8x8xf32> to vector<8xf32>
    %37 = vector.shape_cast %36 : vector<8xf32> to vector<8x1xf32>
    %38 = arith.addf %37, %31 : vector<8x1xf32>
    %cst_17 = arith.constant dense<true> : vector<8x8xi1>
    %39 = arith.xori %27, %cst_17 : vector<8x8xi1>
    %40 = vector.broadcast %38 : vector<8x1xf32> to vector<8x8xf32>
    %41 = arith.cmpf ogt, %40, %22 : vector<8x8xf32>
    %42 = vector.broadcast %29 : vector<8x1xf32> to vector<8x8xf32>
    %43 = arith.subf %22, %42 : vector<8x8xf32>
    %44 = vector.shape_cast %27 : vector<8x8xi1> to vector<8x1x8xi1>
    %45 = vector.shape_cast %22 : vector<8x8xf32> to vector<8x1x8xf32>
    %46 = vector.shape_cast %22 : vector<8x8xf32> to vector<8x8x1xf32>
    %47 = vector.broadcast %45 : vector<8x1x8xf32> to vector<8x8x8xf32>
    %48 = vector.broadcast %46 : vector<8x8x1xf32> to vector<8x8x8xf32>
    %49 = arith.cmpf ogt, %47, %48 : vector<8x8x8xf32>
    %50 = vector.broadcast %44 : vector<8x1x8xi1> to vector<8x8x8xi1>
    %51 = arith.andi %50, %49 : vector<8x8x8xi1>
    %52 = vector.shape_cast %43 : vector<8x8xf32> to vector<8x1x8xf32>
    %cst_18 = arith.constant 0.000000e+00 : f32
    %53 = vector.shape_cast %52 : vector<8x1x8xf32> to vector<8x1x8xf32>
    %54 = vector.broadcast %53 : vector<8x1x8xf32> to vector<8x8x8xf32>
    %55 = vector.broadcast %cst_18 : f32 to vector<8x8x8xf32>
    %56 = arith.select %51, %54, %55 : vector<8x8x8xi1>, vector<8x8x8xf32>
    %cst_19 = arith.constant dense<0x7F800000> : vector<8x8xf32>
    %57 = vector.multi_reduction <minimumf>, %56, %cst_19 [2] : vector<8x8x8xf32> to vector<8x8xf32>
    %58 = vector.broadcast %29 : vector<8x1xf32> to vector<8x8xf32>
    %59 = arith.addf %57, %58 : vector<8x8xf32>
    %60 = vector.shape_cast %38 : vector<8x1xf32> to vector<8x1xf32>
    %61 = vector.broadcast %60 : vector<8x1xf32> to vector<8x8xf32>
    %62 = arith.select %41, %59, %61 : vector<8x8xi1>, vector<8x8xf32>
    %cst_20 = arith.constant 1.000000e+00 : f32
    %63 = vector.broadcast %cst_20 : f32 to vector<8x8xf32>
    %64 = arith.addf %63, %22 : vector<8x8xf32>
    %65 = arith.subf %64, %62 : vector<8x8xf32>
    %66 = arith.andi %39, %18 : vector<8x8xi1>
    %cst_21 = arith.constant 0.000000e+00 : f32
    %67 = vector.broadcast %cst_21 : f32 to vector<8x8xf32>
    %68 = arith.maximumf %65, %67 : vector<8x8xf32>
    %cst_22 = arith.constant 0.000000e+00 : f32
    %69 = vector.broadcast %cst_22 : f32 to vector<8x8xf32>
    %70 = arith.select %66, %68, %69 : vector<8x8xi1>, vector<8x8xf32>
    %c0_i32 = arith.constant 0 : i32
    %71 = arith.cmpi eq, %arg1, %c0_i32 : i32
    %72 = arith.extui %71 : i1 to i32
    %c0_i32_23 = arith.constant 0 : i32
    %73 = arith.cmpi ne, %72, %c0_i32_23 : i32
    scf.if %73 {
      %cst_29 = arith.constant 0.000000e+00 : f32
      %79 = vector.broadcast %cst_29 : f32 to vector<8x1xf32>
      %c0_30 = arith.constant 0 : index
      %c0_31 = arith.constant 0 : index
      %80 = vector.load %arg10[%c0_30, %c0_31] : memref<8x1xf32, #tpu.memory_space<vmem>>, vector<8x1xf32>
      tpu.vector_store %arg10[%c0_30, %c0_31], %79 {strides = array<i32>} : memref<8x1xf32, #tpu.memory_space<vmem>>, vector<8x1xf32>,
    } else {
    }
    %c0_24 = arith.constant 0 : index
    %c0_25 = arith.constant 0 : index
    %74 = vector.load %arg10[%c0_24, %c0_25] : memref<8x1xf32, #tpu.memory_space<vmem>>, vector<8x1xf32>
    %cst_26 = arith.constant dense<0.000000e+00> : vector<8xf32>
    %75 = vector.multi_reduction <add>, %70, %cst_26 [1] : vector<8x8xf32> to vector<8xf32>
    %76 = vector.shape_cast %75 : vector<8xf32> to vector<8x1xf32>
    %77 = arith.addf %74, %76 : vector<8x1xf32>
    %c0_27 = arith.constant 0 : index
    %c0_28 = arith.constant 0 : index
    %78 = vector.load %arg10[%c0_27, %c0_28] : memref<8x1xf32, #tpu.memory_space<vmem>>, vector<8x1xf32>
    tpu.vector_store %arg10[%c0_27, %c0_28], %77 {strides = array<i32>} : memref<8x1xf32, #tpu.memory_space<vmem>>, vector<8x1xf32>,
    return
  }
  func.func @transform_0(%arg0: i32, %arg1: i32) -> (i32, i32) {
    %c0_i32 = arith.constant 0 : i32
    %c0_i32_0 = arith.constant 0 : i32
    return %arg0, %c0_i32 : i32, i32
  }
  func.func @transform_1(%arg0: i32, %arg1: i32) -> (i32, i32) {
    %c0_i32 = arith.constant 0 : i32
    %c0_i32_0 = arith.constant 0 : i32
    %c0_i32_1 = arith.constant 0 : i32
    return %c0_i32, %c0_i32_0 : i32, i32
  }
  func.func @transform_2(%arg0: i32, %arg1: i32) -> (i32, i32) {
    %c0_i32 = arith.constant 0 : i32
    %c0_i32_0 = arith.constant 0 : i32
    return %arg1, %c0_i32 : i32, i32
  }
  func.func @transform_3(%arg0: i32, %arg1: i32) -> (i32, i32) {
    %c0_i32 = arith.constant 0 : i32
    %c0_i32_0 = arith.constant 0 : i32
    return %arg0, %c0_i32 : i32, i32
  }
  func.func @transform_4(%arg0: i32, %arg1: i32) -> (i32, i32) {
    %c0_i32 = arith.constant 0 : i32
    %c0_i32_0 = arith.constant 0 : i32
    %c0_i32_1 = arith.constant 0 : i32
    return %c0_i32, %c0_i32_0 : i32, i32
  }
  func.func @transform_5(%arg0: i32, %arg1: i32) -> (i32, i32) {
    %c0_i32 = arith.constant 0 : i32
    %c0_i32_0 = arith.constant 0 : i32
    return %c0_i32, %arg1 : i32, i32
  }
  func.func @transform_6(%arg0: i32, %arg1: i32) -> (i32, i32) {
    %c0_i32 = arith.constant 0 : i32
    %c0_i32_0 = arith.constant 0 : i32
    %c0_i32_1 = arith.constant 0 : i32
    return %c0_i32, %c0_i32_0 : i32, i32
  }
  func.func @transform_7(%arg0: i32, %arg1: i32) -> (i32, i32) {
    %c0_i32 = arith.constant 0 : i32
    %c0_i32_0 = arith.constant 0 : i32
    return %c0_i32, %arg1 : i32, i32
  }
  func.func @transform_8(%arg0: i32, %arg1: i32) -> (i32, i32) {
    %c0_i32 = arith.constant 0 : i32
    %c0_i32_0 = arith.constant 0 : i32
    return %arg0, %c0_i32 : i32, i32
  }
}

</mosaic_0001>

<bundles_post_ra>
// kernel: tpu_custom_call.1
= control target key start
LH: loop header
LB: loop body
LE: loop exit
PB: predicated region body
PF: predicated region fallthrough
CT: control target
= control target key end

     0   :  { %13 = vsyncpa [#allocation3], 0  ;;  %s1138_s0 = inlined_call_operand.vmem [shape: f32[8,32], index: 0, kind: input, shape index: {}]   ;;  %s1139_s1 = inlined_call_operand.hbm [shape: f32[8,32], index: 1, kind: input, shape index: {}]   ;;  %s1140_s2 = inlined_call_operand.hbm [shape: f32[8,32], index: 2, kind: input, shape index: {}]   ;;  %s1141_s3 = inlined_call_operand.vmem [shape: s32[8,1], index: 3, kind: input, shape index: {}]   ;;  %s1142_s4 = inlined_call_operand.vmem [shape: s32[1,8], index: 4, kind: input, shape index: {}]   ;;  %s1143_s5 = inlined_call_operand.vmem [shape: s32[1,8], index: 5, kind: input, shape index: {}]   ;;  %s1144_s6 = inlined_call_operand.vmem [shape: f32[1,8], index: 6, kind: input, shape index: {}]   ;;  %s1145_s7 = inlined_call_operand.vmem [shape: f32[1,8], index: 7, kind: input, shape index: {}]   ;;  %s1146_s8 = inlined_call_operand.vmem [shape: f32[8,1], index: 8, kind: output, shape index: {}]  }
   0x1   :  { %14 = vsyncpa [#allocation5], 0  ;;  %s789_s27 = smov [#allocation2]   ;;  %s790_s29 = smov [#allocation4]  }
   0x2   :  { %s23_s28 = sshll.u32 %s789_s27, 4  ;;  %s33_s30 = sshll.u32 %s790_s29, 4  ;;  %s24_s28 = int_to_ptr.vmem [resolvable:$true] %s23_s28  ;;  %s34_s30 = int_to_ptr.vmem [resolvable:$true] %s33_s30 }
   0x3   :  { %s753_s9 = scalar_lea.vmem %s24_s28, 128  ;;  %p758_p1 = scmp.lt.s32.totalorder %s24_s28, %s24_s28 }
   0x4   :  { %p754_p0 = scmp.ne.s32.totalorder %s24_s28, %s753_s9  ;;  %p759_p2 = scmp.lt.s32.totalorder %s753_s9, %s753_s9 }
   0x6   :  { %p760_p3 = por %p759_p2, %p758_p1 }
   0x8   :  { %p761_p4 = pnand %p760_p3, %p754_p0 }
   0xa   :  { %764 = shalt.err (!%p761_p4)
}
   0xb   :  { %26 = dma.hbm_to_vmem [thread:$0]  %s1139_s1, 128, %s24_s28, [#allocation3]  }
   0xc   :  { %s773_s10 = scalar_lea.vmem %s34_s30, 128  ;;  %p778_p6 = scmp.lt.s32.totalorder %s34_s30, %s34_s30 }
   0xd   :  { %p774_p5 = scmp.ne.s32.totalorder %s34_s30, %s773_s10  ;;  %p779_p7 = scmp.lt.s32.totalorder %s773_s10, %s773_s10 }
   0xf   :  { %p780_p8 = por %p779_p7, %p778_p6 }
  0x11   :  { %p781_p9 = pnand %p780_p8, %p774_p5 }
  0x13   :  { %784 = shalt.err (!%p781_p9)
}
  0x14   :  { %36 = dma.hbm_to_vmem [thread:$0]  %s1140_s2, 128, %s34_s30, [#allocation5]  }
  0x15   :  { %785 = dma.done.wait [#allocation3], 128  }
  0x16   :  { %786 = vsyncadd [#allocation3], 4294967168 }
  0x17   :  { %787 = dma.done.wait [#allocation5], 128  }
  0x18   :  { %788 = vsyncadd [#allocation5], 4294967168  ;;  %vm710_vm0 = vcmask 7168   ;;  %v791_v0 = vmov 0.0   ;;  %vm792_vm1 = vmmov 0   ;;  %v793_v1 = vmov 0  }
  0x19   :  { %731 = vmatprep.subr.mxu0 %v791_v0  ;;  %711 = vst.msk [vmem:[%s1146_s8] sm:$0xff] %vm710_vm0, %v791_v0  ;;  %733 = vmatprep.mubr.msk.f32.mxu0 %vm792_vm1, %v791_v0  ;;  %vm55_vm2 = vcmask 261120   ;;  %v54_v2 = vld [vmem:[#allocation2] sm:$0xff]  ;;  %v147_v7 = vlaneseq  ;;  %vm166_vm4 = vcmask 64512   ;;  %v794_v38 = vmov 1966171168  }
  0x1a   :  { %743 = vset.pattern.permute.xlu1 %v793_v1  ;;  %744 = vset.pattern.permute.xlu0 %v793_v1  ;;  %v53_v3 = vld [vmem:[%s1138_s0] sm:$0xff]  ;;  %v185_v39 = vunpack.c.l.s4 %v794_v38 }
  0x1b   :  { %v156_v4 = vld [vmem:[%s1141_s3] sm:$0xff]  ;;  %732 = vmatpush3.xpose.msk.msra.mxu0 %vm55_vm2, %v54_v2  ;;  %v132_v5 = vmul.f32 %v53_v3, %v53_v3  ;;  %v859_v8 = vshrl.u32 %v147_v7, 7  ;;  %v861_v9 = vand.u32 127, %v147_v7 }
  0x1c   :  { %159 = vperm.xlu1 %743, %v156_v4   ;;  %v727_v11 = vld [vmem:[%s1144_s6] ss:$0 sm:$0xff]  ;;  %v186_v42 = vunpack.c.0.s8 %v185_v39 }
  0x1d   :  { %v133_v6 = vsel %vm55_vm2, %v132_v5, 0.0  ;;  %v865_v10 = vsub.s32 %v861_v9, %v859_v8  ;;  %vm153_vm3 = vcmp.ne.s32.totalorder %v861_v9, %v859_v8  ;;  %v873_v18 = vsub.s32 0, %v859_v8  ;;  %v917_v40 = vld [vmem:[%s1142_s4] ss:$0 sm:$0xff] }
  0x1e   :  { %734 = vmatmul.mubr.msk.f32.vlgmr.msra.gmra.mxu0 %vm55_vm2, %v53_v3  ;;  %134 = vadd.xlane.f32.xlu0 %v133_v6  ;;  %v306_v23 = vsub.s32 2, %v859_v8  ;;  %v313_v25 = vsub.s32 3, %v859_v8  ;;  %v320_v27 = vsub.s32 4, %v859_v8  ;;  %v327_v29 = vsub.s32 5, %v859_v8 }
  0x1f   :  { %v334_v31 = vsub.s32 6, %v859_v8  ;;  %v299_v32 = vsub.s32 1, %v859_v8  ;;  %v341_v34 = vsub.s32 7, %v859_v8  ;;  %v928_v44 = vsub.s32 %v186_v42, %v859_v8 }
  0x97   :  { %v919_v41 = vpop.permute.xlu1 %159 }
  0x98   :  { %vm165_vm5 = vcmp.ne.s32.totalorder %v919_v41, %v917_v40 }
  0x99   :  { %v182_v43 = vsel %vm165_vm5, 1, %v793_v1 }
  0x9a   :  { %v190_v45 = vrot.slane %v182_v43, %v928_v44  ;;  %v183_v47 = vcombine.high %v182_v43, %v182_v43 }
  0x9c   :  { %v198_v48 = vcombine.high %v190_v45, %v190_v45  ;;  %v197_v50 = vrot.slane %v183_v47, %v928_v44  ;;  %v206_v52 = vrot.slane %v190_v45, %v928_v44 }
  0x9e   :  { %v220_v51 = vrot.slane %v198_v48, %v928_v44  ;;  %v199_v53 = vcombine.high %v197_v50, %v197_v50  ;;  %v228_v54 = vcombine.high %v206_v52, %v206_v52  ;;  %vm232_vm6 = vcmp.ne.s32.totalorder %v206_v52, 0 }
  0x9f   :  { %v213_v60 = vrot.slane %v197_v50, %v928_v44  ;;  %v394_v61 = vsel %vm232_vm6, 1, %v793_v1 }
  0xa0   :  { %v230_v55 = vcombine.high %v220_v51, %v220_v51  ;;  %v227_v58 = vrot.slane %v199_v53, %v928_v44  ;;  %vm234_vm7 = vcmp.ne.s32.totalorder %v228_v54, 0  ;;  %v405_v5 = vrot.slane %v394_v61, %v873_v18 }
  0xa1   :  { %v396_v63 = vsel %vm234_vm7, 1, %v793_v1  ;;  %vm236_vm10 = vcmp.ne.s32.totalorder %v213_v60, 0  ;;  %vm233_vm11 = vcmp.ne.s32.totalorder %v220_v51, 0 }
  0xa2   :  { %vm235_vm8 = vcmp.ne.s32.totalorder %v230_v55, 0  ;;  %vm237_vm9 = vcmp.ne.s32.totalorder %v227_v58, 0  ;;  %v413_v6 = vrot.slane %v396_v63, %v873_v18  ;;  %vm964_vm12 = vcmp.eq.s32.totalorder %v405_v5, 1 }
  0xa3   :  { %v397_v2 = vsel %vm235_vm8, 1, %v793_v1 }
  0xa4   :  { %vm968_vm13 = vcmp.eq.s32.totalorder %v413_v6, 1 }
  0xa7   :  { %v135_v12 = vpop.xlane.xlu0 %134 }
  0xa8   :  { %v143_v13 = vadd.f32 %v727_v11, %v135_v12  ;;  %v399_v11 = vsel %vm237_vm9, 1, %v793_v1  ;;  %v417_v12 = vrot.slane %v397_v2, %v873_v18 }
  0xaa   :  { %vm975_vm14 = vcmp.eq.s32.totalorder %v417_v12, 1 }
  0xde   :  { %v128_v14 = vpop.f32.mrf.mxu0 }
  0xdf   :  { %v144_v15 = vmul.f32 2.0, %v128_v14 }
  0xe0   :  { %v735_v16 = vpop.f32.mrf.mxu0 }
  0xe1   :  { %v145_v17 = vsub.f32 %v143_v13, %v144_v15  ;;  %v229_v13 = vcombine.high %v213_v60, %v213_v60  ;;  %v398_v15 = vsel %vm236_vm10, 1, %v793_v1 }
  0xe3   :  { %v154_v19 = vmax.f32 %v145_v17, 0.0  ;;  %vm238_vm15 = vcmp.ne.s32.totalorder %v229_v13, 0 }
  0xe4   :  { %v400_v53 = vsel %vm238_vm15, 1, %v793_v1 }
  0xe5   :  { %v878_v20 = vsel %vm153_vm3, %v154_v19, 0.0  ;;  %v425_v19 = vrot.slane %v399_v11, %v873_v18 }
  0xe6   :  { %v167_v21 = vsel %vm166_vm4, %v878_v20, -inf  ;;  %v293_v22 = vrot.slane %v878_v20, %v873_v18  ;;  %v307_v24 = vrot.slane %v878_v20, %v306_v23  ;;  %v314_v26 = vrot.slane %v878_v20, %v313_v25 }
  0xe7   :  { %168 = vmax.xlane.f32.xlu0 %v167_v21  ;;  %v321_v28 = vrot.slane %v878_v20, %v320_v27  ;;  %v328_v30 = vrot.slane %v878_v20, %v327_v29  ;;  %v335_v33 = vrot.slane %v878_v20, %v334_v31  ;;  %v300_v35 = vrot.slane %v878_v20, %v299_v32 }
  0xe8   :  { %295 = vbcast.lane.b32.xlu1 %v293_v22, 256  ;;  %v342_v36 = vrot.slane %v878_v20, %v341_v34  ;;  %v170_v37 = vsel %vm166_vm4, %v878_v20, inf  ;;  %v248_v56 = vrot.slane %v878_v20, %v928_v44  ;;  %v241_v59 = vcombine.high %v878_v20, %v878_v20 }
  0xe9   :  { %v395_v21 = vsel %vm233_vm11, 1, %v793_v1  ;;  %vm988_vm1 = vcmp.eq.s32.totalorder %v425_v19, 1  ;;  %v429_v19 = vrot.slane %v400_v53, %v873_v18 }
  0xea   :  { %v256_v62 = vcombine.high %v248_v56, %v248_v56  ;;  %v264_v0 = vrot.slane %v248_v56, %v928_v44  ;;  %v255_v4 = vrot.slane %v241_v59, %v928_v44  ;;  %v409_v45 = vrot.slane %v395_v21, %v873_v18 }
  0xec   :  { %309 = vbcast.lane.b32.xlu1 %v307_v24, 256  ;;  %v278_v7 = vrot.slane %v256_v62, %v928_v44  ;;  %v286_v14 = vcombine.high %v264_v0, %v264_v0  ;;  %v257_v16 = vcombine.high %v255_v4, %v255_v4  ;;  %v960_v17 = vrot.slane %v255_v4, %v928_v44 }
  0xed   :  { %vm1013_vm8 = vcmp.eq.s32.totalorder %v409_v45, 1 }
  0xee   :  { %v357_v39 = vrot.slane %v286_v14, %v873_v18  ;;  %v285_v42 = vrot.slane %v257_v16, %v928_v44  ;;  %v353_v43 = vrot.slane %v278_v7, %v873_v18  ;;  %v365_v47 = vrot.slane %v960_v17, %v873_v18 }
  0xef   :  { %v287_v54 = vcombine.high %v960_v17, %v960_v17 }
  0xf0   :  { %316 = vbcast.lane.b32.xlu1 %v314_v26, 256  ;;  %v288_v26 = vcombine.high %v278_v7, %v278_v7  ;;  %v369_v63 = vrot.slane %v285_v42, %v873_v18  ;;  %v289_v2 = vcombine.high %v285_v42, %v285_v42 }
  0xf2   :  { %v361_v52 = vrot.slane %v288_v26, %v873_v18  ;;  %v377_v21 = vrot.slane %v289_v2, %v873_v18 }
  0xf4   :  { %323 = vbcast.lane.b32.xlu1 %v321_v28, 256 }
  0xf8   :  { %330 = vbcast.lane.b32.xlu1 %v328_v30, 256 }
  0xfc   :  { %337 = vbcast.lane.b32.xlu1 %v335_v33, 256  ;;  %v231_v33 = vcombine.high %v227_v58, %v227_v58 }
  0xfd   :  { %302 = vbcast.lane.b32.xlu0 %v300_v35, 256  ;;  %v349_v35 = vrot.slane %v264_v0, %v873_v18 }
  0xfe   :  { %vm997_vm2 = vcmp.ne.s32.totalorder %v231_v33, 0 }
  0xff   :  { %v401_v12 = vsel %vm997_vm2, 1, %v793_v1 }
 0x100   :  { %344 = vbcast.lane.b32.xlu1 %v342_v36, 256  ;;  %v433_v33 = vrot.slane %v401_v12, %v873_v18 }
 0x11c   :  { %171 = vmin.xlane.f32.xlu0 %v170_v37  ;;  %v421_v37 = vrot.slane %v398_v15, %v873_v18 }
 0x11e   :  { %vm1006_vm7 = vcmp.eq.s32.totalorder %v421_v37, 1 }
 0x15a   :  { %v931_v46 = vpop.permute.xlu1 %295 }
 0x15b   :  { %vm1002_vm6 = vcmp.gt.f32.partialorder %v349_v35, %v931_v46 }
 0x15c   :  { %vm442_vm10 = vmand %vm964_vm12, %vm1002_vm6 }
 0x15e   :  { %v933_v49 = vpop.permute.xlu1 %309 }
 0x15f   :  { %vm388_vm11 = vcmp.gt.f32.partialorder %v357_v39, %v933_v49 }
 0x160   :  { %vm1045_vm2 = vmand %vm968_vm13, %vm388_vm11 }
 0x162   :  { %v940_v57 = vpop.permute.xlu1 %316 }
 0x163   :  { %vm389_vm15 = vcmp.gt.f32.partialorder %v361_v52, %v940_v57 }
 0x166   :  { %v950_v3 = vpop.permute.xlu1 %323 }
 0x167   :  { %vm1060_vm13 = vcmp.gt.f32.partialorder %v365_v47, %v950_v3  ;;  %v373_v3 = vrot.slane %v287_v54, %v873_v18 }
 0x168   :  { %vm446_vm11 = vmand %vm1006_vm7, %vm1060_vm13  ;;  %vm685_vm7 = vcmask 1041409   ;;  %vm691_vm13 = vcmask 1044484  }
 0x16a   :  { %v331_v28 = vpop.permute.xlu1 %330 }
 0x16b   :  { %vm1049_vm6 = vcmp.gt.f32.partialorder %v369_v63, %v331_v28 }
 0x16e   :  { %v338_v0 = vpop.permute.xlu1 %337 }
 0x170   :  { %v972_v30 = vpop.xlane.xlu0 %168 }
 0x171   :  { %v181_v38 = vsub.f32 %v878_v20, %v972_v30  ;;  %v580_v46 = vrot.slane %v972_v30, %v299_v32  ;;  %v588_v32 = vrot.slane %v972_v30, %v313_v25  ;;  %v604_v25 = vrot.slane %v972_v30, %v341_v34 }
 0x172   :  { %v345_v24 = vpop.permute.xlu1 %344 }
 0x173   :  { %v458_v50 = vrot.slane %v181_v38, %v928_v44  ;;  %v451_v51 = vcombine.high %v181_v38, %v181_v38 }
 0x174   :  { %v303_v56 = vpop.permute.xlu0 %302 }
 0x175   :  { %v474_v60 = vrot.slane %v458_v50, %v928_v44  ;;  %v466_v61 = vcombine.high %v458_v50, %v458_v50  ;;  %v465_v62 = vrot.slane %v451_v51, %v928_v44  ;;  %vm1017_vm9 = vcmp.gt.f32.partialorder %v353_v43, %v303_v56 }
 0x176   :  { %vm443_vm12 = vmand %vm1013_vm8, %vm1017_vm9  ;;  %vm441_vm9 = vcmp.eq.s32.totalorder %v433_v33, 1 }
 0x177   :  { %v503_v5 = vrot.slane %v474_v60, %v873_v18  ;;  %v488_v6 = vrot.slane %v466_v61, %v928_v44  ;;  %v496_v7 = vcombine.high %v474_v60, %v474_v60  ;;  %v467_v11 = vcombine.high %v465_v62, %v465_v62  ;;  %vm445_vm8 = vmand %vm975_vm14, %vm389_vm15 }
 0x178   :  { %v481_v13 = vrot.slane %v465_v62, %v928_v44  ;;  %vm447_vm14 = vmand %vm988_vm1, %vm1049_vm6  ;;  %vm440_vm15 = vcmp.eq.s32.totalorder %v429_v19, 1  ;;  %vm687_vm6 = vcmask 1042434  }
 0x179   :  { %v540_v14 = vsel %vm442_vm10, %v503_v5, 0.0  ;;  %v507_v15 = vrot.slane %v488_v6, %v873_v18  ;;  %v498_v16 = vcombine.high %v488_v6, %v488_v6  ;;  %v511_v17 = vrot.slane %v496_v7, %v873_v18 }
 0x17a   :  { %v548_v49 = vsel %vm166_vm4, %v540_v14, inf  ;;  %v495_v1 = vrot.slane %v467_v11, %v928_v44  ;;  %v519_v39 = vrot.slane %v481_v13, %v873_v18  ;;  %v497_v36 = vcombine.high %v481_v13, %v481_v13 }
 0x17b   :  { %549 = vmin.xlane.f32.xlu1 %v548_v49  ;;  %v541_v35 = vsel %vm443_vm12, %v507_v15, 0.0  ;;  %v515_v37 = vrot.slane %v498_v16, %v873_v18  ;;  %v542_v57 = vsel %vm1045_vm2, %v511_v17, 0.0  ;;  %vm393_vm10 = vcmp.gt.f32.partialorder %v377_v21, %v345_v24 }
 0x17c   :  { %v551_v28 = vsel %vm166_vm4, %v541_v35, inf  ;;  %v523_v38 = vrot.slane %v495_v1, %v873_v18  ;;  %v499_v43 = vcombine.high %v495_v1, %v495_v1  ;;  %v554_v51 = vsel %vm166_vm4, %v542_v57, inf  ;;  %vm449_vm1 = vmand %vm441_vm9, %vm393_vm10 }
 0x17d   :  { %552 = vmin.xlane.f32.xlu0 %v551_v28  ;;  %v543_v42 = vsel %vm445_vm8, %v515_v37, 0.0  ;;  %vm392_vm12 = vcmp.gt.f32.partialorder %v373_v3, %v338_v0  ;;  %v544_v48 = vsel %vm446_vm11, %v519_v39, 0.0  ;;  %v527_v52 = vrot.slane %v497_v36, %v873_v18 }
 0x17e   :  { %v557_v45 = vsel %vm166_vm4, %v543_v42, inf  ;;  %v545_v47 = vsel %vm447_vm14, %v523_v38, 0.0  ;;  %v531_v50 = vrot.slane %v499_v43, %v873_v18  ;;  %vm448_vm2 = vmand %vm440_vm15, %vm392_vm12  ;;  %v560_v55 = vsel %vm166_vm4, %v544_v48, inf }
 0x17f   :  { %558 = vmin.xlane.f32.xlu1 %v557_v45  ;;  %v563_v53 = vsel %vm166_vm4, %v545_v47, inf  ;;  %v546_v56 = vsel %vm448_vm2, %v527_v52, 0.0  ;;  %v576_v0 = vrot.slane %v972_v30, %v873_v18  ;;  %v584_v7 = vrot.slane %v972_v30, %v306_v23 }
 0x180   :  { %v547_v54 = vsel %vm449_vm1, %v531_v50, 0.0  ;;  %v566_v59 = vsel %vm166_vm4, %v546_v56, inf  ;;  %v592_v18 = vrot.slane %v972_v30, %v320_v27  ;;  %v596_v23 = vrot.slane %v972_v30, %v327_v29 }
 0x181   :  { %555 = vmin.xlane.f32.xlu0 %v554_v51  ;;  %v569_v58 = vsel %vm166_vm4, %v547_v54, inf  ;;  %v600_v27 = vrot.slane %v972_v30, %v334_v31  ;;  %vm689_vm8 = vcmask 1043459   ;;  %vm693_vm14 = vcmask 1045509  }
 0x182   :  { %vm695_vm9 = vcmask 1046534   ;;  %vm697_vm10 = vcmask 1047559   ;;  %v701_v54 = vadd.f32 1.0, %v878_v20  ;;  %vm795_vm15 = vmmov 1  }
 0x183   :  { %564 = vmin.xlane.f32.xlu1 %v563_v53  ;;  %vm179_vm12 = vmxor %vm165_vm5, %vm795_vm15 }
 0x184   :  { %vm703_vm1 = vmand %vm179_vm12, %vm153_vm3 }
 0x185   :  { %561 = vmin.xlane.f32.xlu0 %v560_v55 }
 0x187   :  { %570 = vmin.xlane.f32.xlu1 %v569_v58 }
 0x189   :  { %567 = vmin.xlane.f32.xlu0 %v566_v59 }
 0x1a5   :  { %v172_v60 = vpop.xlane.xlu0 %171 }
 0x1a6   :  { %v173_v61 = vsub.f32 %v878_v20, %v172_v60 }
 0x1a8   :  { %v174_v62 = vsel %vm165_vm5, %v173_v61, 0.0 }
 0x1a9   :  { %v175_v63 = vsel %vm166_vm4, %v174_v62, -inf }
 0x1aa   :  { %176 = vmax.xlane.f32.xlu0 %v175_v63 }
 0x204   :  { %v550_v2 = vpop.xlane.xlu1 %549 }
 0x205   :  { %v613_v4 = vadd.f32 %v576_v0, %v550_v2 }
 0x206   :  { %v553_v5 = vpop.xlane.xlu0 %552 }
 0x207   :  { %v614_v6 = vadd.f32 %v580_v46, %v553_v5  ;;  %630 = vperm.xlu1 %743, %v613_v4  }
 0x208   :  { %v559_v13 = vpop.xlane.xlu1 %558 }
 0x209   :  { %633 = vperm.xlu0 %744, %v614_v6   ;;  %v616_v16 = vadd.f32 %v588_v32, %v559_v13 }
 0x20a   :  { %v556_v11 = vpop.xlane.xlu0 %555 }
 0x20b   :  { %v615_v12 = vadd.f32 %v584_v7, %v556_v11 }
 0x20c   :  { %v565_v17 = vpop.xlane.xlu1 %564 }
 0x20d   :  { %636 = vperm.xlu1 %743, %v615_v12   ;;  %v618_v19 = vadd.f32 %v596_v23, %v565_v17 }
 0x20e   :  { %v562_v14 = vpop.xlane.xlu0 %561 }
 0x20f   :  { %v617_v15 = vadd.f32 %v592_v18, %v562_v14 }
 0x210   :  { %v571_v1 = vpop.xlane.xlu1 %570 }
 0x211   :  { %642 = vperm.xlu1 %743, %v617_v15   ;;  %v620_v22 = vadd.f32 %v604_v25, %v571_v1 }
 0x212   :  { %v568_v21 = vpop.xlane.xlu0 %567 }
 0x213   :  { %v619_v49 = vadd.f32 %v600_v27, %v568_v21 }
 0x215   :  { %639 = vperm.xlu1 %743, %v616_v16  }
 0x219   :  { %645 = vperm.xlu1 %743, %v618_v19  }
 0x21d   :  { %648 = vperm.xlu1 %743, %v619_v49  }
 0x221   :  { %651 = vperm.xlu1 %743, %v620_v22  }
 0x233   :  { %v177_v29 = vpop.xlane.xlu0 %176 }
 0x234   :  { %v178_v45 = vadd.f32 %v177_v29, %v172_v60 }
 0x236   :  { %vm180_vm11 = vcmp.gt.f32.partialorder %v178_v45, %v878_v20  ;;  %v712_v20 = vld [vmem:[%s1146_s8] sm:$0xff] }
 0x282   :  { %v631_v26 = vpop.permute.xlu1 %630 }
 0x283   :  { %v656_v38 = vrot.slane %v631_v26, %v865_v10 }
 0x284   :  { %v634_v37 = vpop.permute.xlu0 %633 }
 0x285   :  { %v660_v24 = vrot.slane %v634_v37, %v865_v10 }
 0x287   :  { %v686_v30 = vsel %vm685_vm7, %v660_v24, %v656_v38 }
 0x288   :  { %v637_v33 = vpop.permute.xlu1 %636 }
 0x289   :  { %v664_v31 = vrot.slane %v637_v33, %v865_v10 }
 0x28b   :  { %v688_v39 = vsel %vm687_vm6, %v664_v31, %v686_v30 }
 0x28c   :  { %v643_v35 = vpop.permute.xlu1 %642 }
 0x28d   :  { %v672_v36 = vrot.slane %v643_v35, %v865_v10 }
 0x290   :  { %v640_v44 = vpop.permute.xlu1 %639 }
 0x291   :  { %v668_v34 = vrot.slane %v640_v44, %v865_v10 }
 0x293   :  { %v690_v57 = vsel %vm689_vm8, %v668_v34, %v688_v39 }
 0x294   :  { %v646_v28 = vpop.permute.xlu1 %645  ;;  %v692_v47 = vsel %vm691_vm13, %v672_v36, %v690_v57 }
 0x295   :  { %v676_v43 = vrot.slane %v646_v28, %v865_v10 }
 0x297   :  { %v694_v51 = vsel %vm693_vm14, %v676_v43, %v692_v47 }
 0x298   :  { %v649_v42 = vpop.permute.xlu1 %648 }
 0x299   :  { %v680_v3 = vrot.slane %v649_v42, %v865_v10 }
 0x29b   :  { %v696_v52 = vsel %vm695_vm9, %v680_v3, %v694_v51 }
 0x29c   :  { %v652_v50 = vpop.permute.xlu1 %651 }
 0x29d   :  { %v684_v48 = vrot.slane %v652_v50, %v865_v10 }
 0x29f   :  { %v698_v53 = vsel %vm697_vm10, %v684_v48, %v696_v52 }
 0x2a0   :  { %v700_v55 = vsel %vm180_vm11, %v698_v53, %v178_v45 }
 0x2a1   :  { %v702_v56 = vsub.f32 %v701_v54, %v700_v55 }
 0x2a3   :  { %v704_v58 = vmax.f32 %v702_v56, 0.0 }
 0x2a5   :  { %v705_v59 = vsel %vm703_vm1, %v704_v58, 0.0 }
 0x2a6   :  { %v713_v10 = vsel %vm166_vm4, %v705_v59, 0.0 }
 0x2a7   :  { %714 = vadd.xlane.f32.xlu1 %v713_v10 }
 0x330   :  { %v715_v60 = vpop.xlane.xlu1 %714 }
 0x331   :  { %v716_v61 = vadd.f32 %v715_v60, %v712_v20 }
 0x333   :  { %718 = vst.msk [vmem:[%s1146_s8] sm:$0xff] %vm710_vm0, %v716_v61 }
 0x334   :  { %723 = vsyncpa [#allocation3], 1 }
 0x335   :  { %724 = vsyncpa [#allocation5], 1 }

</bundles_post_ra>
